<compile_context>
chip_gen: v5e
topology: v5e:2x2
jax: 0.10.0
libtpu: 0.0.40
codegen_flags: <defaults>
</compile_context>

<pallas_src>
import functools

import jax
import jax.numpy as jnp
from jax.experimental import pallas as pl
from jax.experimental.pallas import tpu as pltpu


def _cdiv(a: int, b: int) -> int:
    return -(-a // b)


def _round_up(x: int, m: int) -> int:
    return ((x + m - 1) // m) * m


# ------------------------------------------------------------------------------------------------
# Kernel 1: streaming masked-sum pooling over the sequence axis (DMA-bound hot loop).
# ------------------------------------------------------------------------------------------------
def _masked_sum_kernel(h1_ref, h2_ref, m_ref, out1_ref, out2_ref, *,
                       seq_len: int, tile_s: int, tiles_per_chunk: int, zero_tail: bool):
    s = pl.program_id(2)

    @pl.when(s == 0)
    def _init():
        out1_ref[...] = jnp.zeros_like(out1_ref)
        out2_ref[...] = jnp.zeros_like(out2_ref)

    h1 = h1_ref[...]                                   # (B, tS, tD)
    h2 = h2_ref[...]
    if zero_tail:
        # Absolute (unclamped) sequence offset of this tile; positions >= seq_len are OOB reads
        # with unspecified content and must be explicitly zeroed (mask*NaN would still be NaN).
        start = (pl.program_id(0) * tiles_per_chunk + s) * tile_s
        rem = seq_len - start                          # may be <= 0 for the duplicated overhang tile
        valid = jax.lax.broadcasted_iota(jnp.int32, (1, tile_s, 1), 1) < rem
        h1 = jnp.where(valid, h1, 0)
        h2 = jnp.where(valid, h2, 0)

    m = m_ref[...]                                     # (B, 1, tS), same dtype as h
    # Masked sum over the sequence tile as a batched (1 x tS) @ (tS x tD) MXU contraction in f32.
    p1 = jnp.einsum('bks,bsd->bkd', m, h1, preferred_element_type=jnp.float32)
    p2 = jnp.einsum('bks,bsd->bkd', m, h2, preferred_element_type=jnp.float32)
    out1_ref[...] += p1[None]                          # out refs are (1, B, 1, tD) f32
    out2_ref[...] += p2[None]


# ------------------------------------------------------------------------------------------------
# Kernel 2: one-shot epilogue (masked mean -> normalize -> similarity -> contrastive loss).
# ------------------------------------------------------------------------------------------------
def _contraclm_epilogue_kernel(s1_ref, s2_ref, cnt_ref, out_ref, *,
                               temperature: float, batch_size: int):
    B = batch_size
    two_b = 2 * B

    # Masked mean.  Rows whose token_mask is all zero give inf/NaN, matching the PyTorch module.
    inv_cnt = pl.reciprocal(cnt_ref[...], approx=False)          # (B, 1)
    f1 = s1_ref[...] * inv_cnt                                   # (B, D)
    f2 = s2_ref[...] * inv_cnt

    # F.normalize(dim=1): x / max(||x||_2, eps), eps = 1e-12
    eps = jnp.float32(1e-12)
    n1 = jnp.sqrt(jnp.sum(f1 * f1, axis=1, keepdims=True))
    n2 = jnp.sqrt(jnp.sum(f2 * f2, axis=1, keepdims=True))
    f1n = f1 / jnp.maximum(n1, eps)
    f2n = f2 / jnp.maximum(n2, eps)

    feats = jnp.concatenate([f1n, f2n], axis=0)                  # (2B, D)
    inv_t = jnp.float32(1.0 / temperature)
    sim = jax.lax.dot_general(                                   # feats @ feats.T on the MXU
        feats, feats,
        dimension_numbers=(((1,), (1,)), ((), ())),
        preferred_element_type=jnp.float32) * inv_t              # (2B, 2B)

    rows = jax.lax.broadcasted_iota(jnp.int32, (two_b, two_b), 0)
    cols = jax.lax.broadcasted_iota(jnp.int32, (two_b, two_b), 1)
    keep = (rows % B) != (cols % B)                              # ~eye(B).repeat(2, 2)
    pos_sel = cols == ((rows + B) % two_b)                       # positive logit of row i

    s_pos = jnp.sum(jnp.where(pos_sel, sim, 0.0), axis=1, keepdims=True)        # (2B, 1)
    # -log(pos / (Ng + pos)) via a row-max-subtracted log-sum-exp (robust for tiny temperature).
    neg_max = jnp.max(jnp.where(keep, sim, -jnp.inf), axis=1, keepdims=True)
    m = jnp.maximum(neg_max, s_pos)
    ng = jnp.sum(jnp.where(keep, jnp.exp(sim - m), 0.0), axis=1, keepdims=True)
    per_row = m + jnp.log(ng + jnp.exp(s_pos - m)) - s_pos
    out_ref[0, 0] = jnp.sum(per_row) / two_b


# ------------------------------------------------------------------------------------------------
# Wrapper
# ------------------------------------------------------------------------------------------------
def contraclm_seq_loss(h1, h2, token_mask, temperature: float = 0.05, _tile_override=None):
    """Pallas TPU implementation of ContraCLMSeqLoss.forward. Returns scalar f32 loss.

    h1, h2: (B, S, D) float32 or bfloat16 (bf16 stays bf16 end-to-end; halves HBM traffic).
    token_mask: (B, S), any numeric/bool dtype.
    """
    B, S, D = h1.shape
    assert h2.shape == (B, S, D) and token_mask.shape == (B, S)
    h_bytes = jnp.dtype(h1.dtype).itemsize

    # ---- Generation-aware VMEM budget (64 MiB/TC on v7x, 128 MiB on v5e/v6e) -------------------
    try:
        vmem_cap = int(pltpu.get_tpu_info().vmem_capacity_bytes)
    except Exception:  # pragma: no cover - conservative fallback (v7x per-core size)
        vmem_cap = 64 * 1024 * 1024
    vmem_budget = min((vmem_cap * 3) // 4, 96 * 1024 * 1024)     # ~48 MiB v7x, ~96 MiB v5e/v6e

    # Per-input h tile: 2 inputs x 2 (double buffer) must stay under ~half the budget.
    max_tile_elems = max(128 * 128, (vmem_budget // 8) // max(1, B * h_bytes))

    if _tile_override is not None:
        ts, td = _tile_override
        num_d = _cdiv(D, td)
    elif S * D <= max_tile_elems:
        ts, td, num_d = S, D, 1                                  # single tile, no padding at all
    elif D <= max_tile_elems // 128:
        td, num_d = D, 1                                         # full D per tile, stream S
        ts = max(128, ((max_tile_elems // D) // 128) * 128)
    else:
        ts = 128                                                 # stream S and tile D
        td_cap = max(128, ((max_tile_elems // ts) // 128) * 128)
        num_d = _cdiv(D, td_cap)
        td = min(td_cap, _round_up(_cdiv(D, num_d), 128))

    d_grid = num_d * td
    num_s_tiles = _cdiv(S, ts)
    num_chunks = 2 if num_s_tiles >= 2 else 1                    # v7x: one S chunk per TensorCore
    tiles_per_chunk = _cdiv(num_s_tiles, num_chunks)
    grid_s_tiles = num_chunks * tiles_per_chunk
    s_grid = grid_s_tiles * ts
    clamp_s = grid_s_tiles > num_s_tiles                         # duplicated overhang tile exists
    zero_tail = s_grid != S                                      # ragged S handled in-kernel

    # Only the tiny (B, S) mask is padded; h1/h2 stream unpadded from HBM (no extra HBM pass).
    # Mask pre-shaped (B, 1, S) in the hidden dtype so pooling is a natural MXU contraction.
    mask_f = token_mask.astype(h1.dtype)
    if s_grid != S:
        mask_f = jnp.pad(mask_f, ((0, 0), (0, s_grid - S)))
    mask3 = mask_f.reshape(B, 1, s_grid)

    def h_index_map(c, d, i, _tpc=tiles_per_chunk, _clamp=clamp_s, _last=num_s_tiles - 1):
        s_idx = c * _tpc + i
        if _clamp:  # never issue a fully-OOB DMA; the duplicated tile is zeroed in-kernel
            s_idx = jnp.minimum(s_idx, _last)
        return (0, s_idx, d)

    mask_index_map = lambda c, d, i, _tpc=tiles_per_chunk: (0, 0, c * _tpc + i)
    out_index_map = lambda c, d, i: (c, 0, 0, d)

    kernel = functools.partial(
        _masked_sum_kernel, seq_len=S, tile_s=ts,
        tiles_per_chunk=tiles_per_chunk, zero_tail=zero_tail)

    h_tile_bytes = B * ts * td * h_bytes
    m_tile_bytes = B * ts * h_bytes
    o_tile_bytes = B * td * 4
    vmem_limit = int(min(
        (vmem_cap * 9) // 10,
        max(16 * 1024 * 1024,
            4 * h_tile_bytes + 4 * m_tile_bytes + 4 * o_tile_bytes + (4 << 20))))

    cost = pl.CostEstimate(
        flops=int(4 * B * S * D),
        transcendentals=0,
        bytes_accessed=int(2 * B * S * D * h_bytes + B * s_grid * h_bytes
                           + 2 * num_chunks * B * d_grid * 4),
    )

    sum1, sum2 = pl.pallas_call(
        kernel,
        out_shape=(jax.ShapeDtypeStruct((num_chunks, B, 1, d_grid), jnp.float32),
                   jax.ShapeDtypeStruct((num_chunks, B, 1, d_grid), jnp.float32)),
        grid_spec=pltpu.PrefetchScalarGridSpec(
            num_scalar_prefetch=0,
            grid=(num_chunks, num_d, tiles_per_chunk),
            in_specs=[
                pl.BlockSpec((B, ts, td), h_index_map),
                pl.BlockSpec((B, ts, td), h_index_map),
                pl.BlockSpec((B, 1, ts), mask_index_map),
            ],
            out_specs=[
                pl.BlockSpec((1, B, 1, td), out_index_map),
                pl.BlockSpec((1, B, 1, td), out_index_map),
            ],
        ),
        compiler_params=pltpu.CompilerParams(
            dimension_semantics=("parallel", "parallel", "arbitrary"),
            vmem_limit_bytes=vmem_limit,
        ),
        cost_estimate=cost,
    )(h1, h2, mask3)

    # Tiny combine (O(num_chunks*B*D)): add the per-core partials, drop any padded D tail.
    s1 = jnp.sum(sum1, axis=0)[:, 0, :D]                         # (B, D) f32
    s2 = jnp.sum(sum2, axis=0)[:, 0, :D]
    cnt = jnp.sum(token_mask.astype(jnp.float32), axis=1, keepdims=True)   # (B, 1) token counts

    epilogue = functools.partial(
        _contraclm_epilogue_kernel, temperature=float(temperature), batch_size=B)
    loss = pl.pallas_call(
        epilogue,
        out_shape=jax.ShapeDtypeStruct((1, 1), jnp.float32),
        in_specs=[pl.BlockSpec(memory_space=pltpu.MemorySpace.VMEM)] * 3,
        out_specs=pl.BlockSpec(memory_space=pltpu.MemorySpace.VMEM),
    )(s1, s2, cnt)
    return loss[0, 0]


# ------------------------------------------------------------------------------------------------
# Pure-JAX reference mirroring the PyTorch forward, for correctness check.
# ------------------------------------------------------------------------------------------------
def _reference_loss(h1, h2, token_mask, temperature=0.05):
    B = h1.shape[0]
    tm = token_mask[:, :, None].astype(jnp.float32)
    f1 = jnp.sum(h1.astype(jnp.float32) * tm, axis=1) / jnp.sum(tm, axis=1)
    f2 = jnp.sum(h2.astype(jnp.float32) * tm, axis=1) / jnp.sum(tm, axis=1)
    f1 = f1 / jnp.maximum(jnp.linalg.norm(f1, axis=1, keepdims=True), 1e-12)
    f2 = f2 / jnp.maximum(jnp.linalg.norm(f2, axis=1, keepdims=True), 1e-12)
    feats = jnp.concatenate([f1, f2], axis=0)
    pos = jnp.exp(jnp.sum(f1 * f2, axis=-1) / temperature)
    pos = jnp.concatenate([pos, pos], axis=0)
    neg = jnp.exp(feats @ feats.T / temperature)
    keep = ~jnp.tile(jnp.eye(B, dtype=bool), (2, 2))
    ng = jnp.sum(jnp.where(keep, neg, 0.0), axis=-1)
    return jnp.mean(-jnp.log(pos / (ng + pos)))


if __name__ == "__main__":
    temperature = 0.05
    key = jax.random.PRNGKey(0)

    # ---- Test 1: small shape, single-tile path ------------------------------------------------
    B, S, D = 2, 8, 32
    k1, k2, key = (*jax.random.split(key, 2), key)
    h1 = jax.random.normal(k1, (B, S, D), dtype=jnp.float32)
    h2 = jax.random.normal(k2, (B, S, D), dtype=jnp.float32)
    lengths = jnp.array([6, 4], dtype=jnp.int32)
    token_mask = (jnp.arange(S)[None, :] < lengths[:, None]).astype(jnp.float32)

    loss = jax.block_until_ready(contraclm_seq_loss(h1, h2, token_mask, temperature))
    ref = jax.block_until_ready(_reference_loss(h1, h2, token_mask, temperature))
    assert jnp.allclose(loss, ref, rtol=1e-4, atol=1e-4), (loss, ref)

    # ---- Test 2: forced small tiles -> exercises gridded / chunked / ragged-tail path ---------
    B2, S2, D2 = 2, 300, 32
    k3, k4 = jax.random.split(jax.random.PRNGKey(1))
    g1 = jax.random.normal(k3, (B2, S2, D2), dtype=jnp.float32)
    g2 = jax.random.normal(k4, (B2, S2, D2), dtype=jnp.float32)
    lengths2 = jnp.array([250, 180], dtype=jnp.int32)
    mask2 = (jnp.arange(S2)[None, :] < lengths2[:, None]).astype(jnp.float32)

    loss2 = jax.block_until_ready(
        contraclm_seq_loss(g1, g2, mask2, temperature, _tile_override=(128, D2)))
    ref2 = jax.block_until_ready(_reference_loss(g1, g2, mask2, temperature))
    assert jnp.allclose(loss2, ref2, rtol=1e-4, atol=1e-4), (loss2, ref2)

    print("KERNEL_OK")
</pallas_src>

<mosaic_0001>
module attributes {stable_mosaic.version = 11 : i64} {
  func.func @_masked_sum_kernel(%arg0: i32, %arg1: i32, %arg2: i32, %arg3: memref<2x8x32xf32, #tpu.memory_space<vmem>>, %arg4: memref<2x8x32xf32, #tpu.memory_space<vmem>>, %arg5: memref<2x1x8xf32, #tpu.memory_space<vmem>>, %arg6: memref<1x2x1x32xf32, #tpu.memory_space<vmem>>, %arg7: memref<1x2x1x32xf32, #tpu.memory_space<vmem>>) attributes {dimension_semantics = [#tpu.dimension_semantics<parallel>, #tpu.dimension_semantics<parallel>, #tpu.dimension_semantics<arbitrary>], iteration_bounds = array<i64: 1, 1, 1>, scalar_prefetch = 0 : i64, scratch_operands = 0 : i64, tpu.core_type = #tpu.core_type<tc>, window_params = [{transform_indices = @transform_0, window_bounds = array<i64: 2, 8, 32>}, {transform_indices = @transform_1, window_bounds = array<i64: 2, 8, 32>}, {transform_indices = @transform_2, window_bounds = array<i64: 2, 1, 8>}, {transform_indices = @transform_3, window_bounds = array<i64: 1, 2, 1, 32>}, {transform_indices = @transform_4, window_bounds = array<i64: 1, 2, 1, 32>}]} {
    %c0_i32 = arith.constant 0 : i32
    %0 = arith.cmpi eq, %arg2, %c0_i32 : i32
    %1 = arith.extui %0 : i1 to i32
    %c0_i32_0 = arith.constant 0 : i32
    %2 = arith.cmpi ne, %1, %c0_i32_0 : i32
    scf.if %2 {
      %cst_26 = arith.constant 0.000000e+00 : f32
      %16 = vector.broadcast %cst_26 : f32 to vector<1x2x1x32xf32>
      %c0_27 = arith.constant 0 : index
      %c0_28 = arith.constant 0 : index
      %c0_29 = arith.constant 0 : index
      %c0_30 = arith.constant 0 : index
      %17 = vector.load %arg6[%c0_27, %c0_28, %c0_29, %c0_30] : memref<1x2x1x32xf32, #tpu.memory_space<vmem>>, vector<1x2x1x32xf32>
      tpu.vector_store %arg6[%c0_27, %c0_28, %c0_29, %c0_30], %16 {strides = array<i32>} : memref<1x2x1x32xf32, #tpu.memory_space<vmem>>, vector<1x2x1x32xf32>,
      %cst_31 = arith.constant 0.000000e+00 : f32
      %18 = vector.broadcast %cst_31 : f32 to vector<1x2x1x32xf32>
      %c0_32 = arith.constant 0 : index
      %c0_33 = arith.constant 0 : index
      %c0_34 = arith.constant 0 : index
      %c0_35 = arith.constant 0 : index
      %19 = vector.load %arg7[%c0_32, %c0_33, %c0_34, %c0_35] : memref<1x2x1x32xf32, #tpu.memory_space<vmem>>, vector<1x2x1x32xf32>
      tpu.vector_store %arg7[%c0_32, %c0_33, %c0_34, %c0_35], %18 {strides = array<i32>} : memref<1x2x1x32xf32, #tpu.memory_space<vmem>>, vector<1x2x1x32xf32>,
    } else {
    }
    %c0 = arith.constant 0 : index
    %c0_1 = arith.constant 0 : index
    %c0_2 = arith.constant 0 : index
    %3 = vector.load %arg3[%c0, %c0_1, %c0_2] : memref<2x8x32xf32, #tpu.memory_space<vmem>>, vector<2x8x32xf32>
    %c0_3 = arith.constant 0 : index
    %c0_4 = arith.constant 0 : index
    %c0_5 = arith.constant 0 : index
    %4 = vector.load %arg4[%c0_3, %c0_4, %c0_5] : memref<2x8x32xf32, #tpu.memory_space<vmem>>, vector<2x8x32xf32>
    %c0_6 = arith.constant 0 : index
    %c0_7 = arith.constant 0 : index
    %c0_8 = arith.constant 0 : index
    %5 = vector.load %arg5[%c0_6, %c0_7, %c0_8] : memref<2x1x8xf32, #tpu.memory_space<vmem>>, vector<2x1x8xf32>
    "tpu.trace_start"() <{level = 10 : i32, message = "bks,bsd->bkd"}> : () -> ()
    %cst = arith.constant dense<0.000000e+00> : vector<2x1x32xf32>
    %6 = tpu.matmul %5, %3, %cst {dimension_numbers = #tpu.dot_dimension_numbers<[2], [1], [1], [2], [0, 0, 0, 1, 1, 2], [0], [0]>} : vector<2x1x8xf32>, vector<2x8x32xf32>, vector<2x1x32xf32> -> vector<2x1x32xf32>
    %cst_9 = arith.constant dense<0.000000e+00> : vector<2x1x32xf32>
    %7 = tpu.matmul %5, %4, %cst_9 {dimension_numbers = #tpu.dot_dimension_numbers<[2], [1], [1], [2], [0, 0, 0, 1, 1, 2], [0], [0]>} : vector<2x1x8xf32>, vector<2x8x32xf32>, vector<2x1x32xf32> -> vector<2x1x32xf32>
    "tpu.trace_stop"() : () -> ()
    %c0_10 = arith.constant 0 : index
    %c0_11 = arith.constant 0 : index
    %c0_12 = arith.constant 0 : index
    %c0_13 = arith.constant 0 : index
    %8 = vector.load %arg6[%c0_10, %c0_11, %c0_12, %c0_13] : memref<1x2x1x32xf32, #tpu.memory_space<vmem>>, vector<1x2x1x32xf32>
    %9 = vector.shape_cast %6 : vector<2x1x32xf32> to vector<1x2x1x32xf32>
    %10 = arith.addf %8, %9 : vector<1x2x1x32xf32>
    %c0_14 = arith.constant 0 : index
    %c0_15 = arith.constant 0 : index
    %c0_16 = arith.constant 0 : index
    %c0_17 = arith.constant 0 : index
    %11 = vector.load %arg6[%c0_14, %c0_15, %c0_16, %c0_17] : memref<1x2x1x32xf32, #tpu.memory_space<vmem>>, vector<1x2x1x32xf32>
    tpu.vector_store %arg6[%c0_14, %c0_15, %c0_16, %c0_17], %10 {strides = array<i32>} : memref<1x2x1x32xf32, #tpu.memory_space<vmem>>, vector<1x2x1x32xf32>,
    %c0_18 = arith.constant 0 : index
    %c0_19 = arith.constant 0 : index
    %c0_20 = arith.constant 0 : index
    %c0_21 = arith.constant 0 : index
    %12 = vector.load %arg7[%c0_18, %c0_19, %c0_20, %c0_21] : memref<1x2x1x32xf32, #tpu.memory_space<vmem>>, vector<1x2x1x32xf32>
    %13 = vector.shape_cast %7 : vector<2x1x32xf32> to vector<1x2x1x32xf32>
    %14 = arith.addf %12, %13 : vector<1x2x1x32xf32>
    %c0_22 = arith.constant 0 : index
    %c0_23 = arith.constant 0 : index
    %c0_24 = arith.constant 0 : index
    %c0_25 = arith.constant 0 : index
    %15 = vector.load %arg7[%c0_22, %c0_23, %c0_24, %c0_25] : memref<1x2x1x32xf32, #tpu.memory_space<vmem>>, vector<1x2x1x32xf32>
    tpu.vector_store %arg7[%c0_22, %c0_23, %c0_24, %c0_25], %14 {strides = array<i32>} : memref<1x2x1x32xf32, #tpu.memory_space<vmem>>, vector<1x2x1x32xf32>,
    return
  }
  func.func @transform_0(%arg0: i32, %arg1: i32, %arg2: i32) -> (i32, i32, i32) {
    %c1_i32 = arith.constant 1 : i32
    %0 = arith.muli %arg0, %c1_i32 : i32
    %1 = arith.addi %0, %arg2 : i32
    %c0_i32 = arith.constant 0 : i32
    %c0_i32_0 = arith.constant 0 : i32
    return %c0_i32, %1, %arg1 : i32, i32, i32
  }
  func.func @transform_1(%arg0: i32, %arg1: i32, %arg2: i32) -> (i32, i32, i32) {
    %c1_i32 = arith.constant 1 : i32
    %0 = arith.muli %arg0, %c1_i32 : i32
    %1 = arith.addi %0, %arg2 : i32
    %c0_i32 = arith.constant 0 : i32
    %c0_i32_0 = arith.constant 0 : i32
    return %c0_i32, %1, %arg1 : i32, i32, i32
  }
  func.func @transform_2(%arg0: i32, %arg1: i32, %arg2: i32) -> (i32, i32, i32) {
    %c1_i32 = arith.constant 1 : i32
    %0 = arith.muli %arg0, %c1_i32 : i32
    %1 = arith.addi %0, %arg2 : i32
    %c0_i32 = arith.constant 0 : i32
    %c0_i32_0 = arith.constant 0 : i32
    %c0_i32_1 = arith.constant 0 : i32
    return %c0_i32, %c0_i32_0, %1 : i32, i32, i32
  }
  func.func @transform_3(%arg0: i32, %arg1: i32, %arg2: i32) -> (i32, i32, i32, i32) {
    %c0_i32 = arith.constant 0 : i32
    %c0_i32_0 = arith.constant 0 : i32
    %c0_i32_1 = arith.constant 0 : i32
    return %arg0, %c0_i32, %c0_i32_0, %arg1 : i32, i32, i32, i32
  }
  func.func @transform_4(%arg0: i32, %arg1: i32, %arg2: i32) -> (i32, i32, i32, i32) {
    %c0_i32 = arith.constant 0 : i32
    %c0_i32_0 = arith.constant 0 : i32
    %c0_i32_1 = arith.constant 0 : i32
    return %arg0, %c0_i32, %c0_i32_0, %arg1 : i32, i32, i32, i32
  }
}

</mosaic_0001>

<bundles_post_ra>
// kernel: tpu_custom_call.1
= control target key start
LH: loop header
LB: loop body
LE: loop exit
PB: predicated region body
PF: predicated region fallthrough
CT: control target
= control target key end

     0   :  { %10 = vsyncpa [#allocation3], 0  ;;  %s438_s0 = inlined_call_operand.hbm [shape: f32[2,8,32], index: 0, kind: input, shape index: {}]   ;;  %s439_s1 = inlined_call_operand.hbm [shape: f32[2,8,32], index: 1, kind: input, shape index: {}]   ;;  %s440_s2 = inlined_call_operand.hbm [shape: f32[2,1,8], index: 2, kind: input, shape index: {}]   ;;  %s441_s3 = inlined_call_operand.hbm [shape: f32[1,2,1,32], index: 3, kind: output, shape index: {0}]   ;;  %s442_s4 = inlined_call_operand.hbm [shape: f32[1,2,1,32], index: 4, kind: output, shape index: {1}]  }
   0x1   :  { %11 = vsyncpa [#allocation6], 0 }
   0x2   :  { %12 = vsyncpa [#allocation4], 0 }
   0x3   :  { %13 = vsyncpa [#allocation10], 0  ;;  %s37_s17 = sshll.u32 %s439_s1, 4  ;;  %s371_s18 = smov [#allocation5]   ;;  %s38_s17 = int_to_ptr.hbm [resolvable:$true] %s37_s17 }
   0x4   :  { %s39_s19 = sshll.u32 %s371_s18, 4  ;;  %s21_s22 = sshll.u32 %s438_s0, 4  ;;  %s40_s19 = int_to_ptr.vmem [resolvable:$true] %s39_s19  ;;  %s22_s22 = int_to_ptr.hbm [resolvable:$true] %s21_s22 }
   0x5   :  { %s372_s23 = smov 128   ;;  %s373_s24 = smov 8  }
   0x6   :  { %45 = dma.hbm_to_vmem [thread:$0]  %s38_s17, 256, %s40_s19, [#allocation6], %s372_s23, %s372_s23, %s373_s24  }
   0x7   :  { %s374_s25 = smov [#allocation2]   ;;  %s52_s29 = sshll.u32 %s440_s2, 4  ;;  %s53_s29 = int_to_ptr.hbm [resolvable:$true] %s52_s29 }
   0x8   :  { %s23_s26 = sshll.u32 %s374_s25, 4  ;;  %s375_s1 = smov [#allocation7]   ;;  %s24_s26 = int_to_ptr.vmem [resolvable:$true] %s23_s26 }
   0x9   :  { %29 = dma.hbm_to_vmem [thread:$0]  %s22_s22, 256, %s24_s26, [#allocation3], %s372_s23, %s372_s23, %s373_s24  }
   0xa   :  { %s54_s30 = sshll.u32 %s375_s1, 4  ;;  %s376_s5 = smov 16   ;;  %s55_s30 = int_to_ptr.vmem [resolvable:$true] %s54_s30 }
   0xb   :  { %s377_s6 = smov 1  }
   0xc   :  { %60 = dma.hbm_to_vmem [thread:$0]  %s53_s29, 32, %s55_s30, [#allocation6], %s376_s5, %s376_s5, %s377_s6  }
   0xd   :  { %363 = dma.done.wait [#allocation3], 256  }
   0xe   :  { %364 = vsyncadd [#allocation3], 4294967040 }
   0xf   :  { %365 = dma.done.wait [#allocation6], 288  }
  0x10   :  { %366 = vsyncadd [#allocation6], 4294967008  ;;  %vm80_vm0 = vcmask 253952   ;;  %v378_v0 = vmov 0.0   ;;  %vm91_vm1 = vcmask 64512   ;;  %v87_v1 = vld [vmem:[#allocation5] sm:$0xff] }
  0x11   :  { %81 = vst.msk [vmem:[#allocation8] sm:$0x1] %vm80_vm0, %v378_v0  ;;  %v88_v2 = vld [vmem:[#allocation5 + $0x8] sm:$0xff]  ;;  %v89_v3 = vld [vmem:[#allocation7] sm:$0x1]  ;;  %153 = vmatpush.msra.mxu2 %v87_v1  ;;  %v86_v6 = vld [vmem:[#allocation2 + $0x8] sm:$0xff] }
  0x12   :  { %82 = vst.msk [vmem:[#allocation8 + $0x1] sm:$0x1] %vm80_vm0, %v378_v0  ;;  %173 = vmatpush.msra.mxu3 %v88_v2  ;;  %v90_v4 = vld [vmem:[#allocation7 + $0x1] sm:$0x1]  ;;  %231 = vmatmul.msk.f32.vlgmr.msra.gmra.mxu2 %vm91_vm1, %v89_v3  ;;  %s379_s0 = smov [#allocation8]   ;;  %s197_s9 = sshll.u32 %s441_s3, 4  ;;  %s198_s9 = int_to_ptr.hbm [resolvable:$true] %s197_s9 }
  0x13   :  { %83 = vst.msk [vmem:[#allocation9] sm:$0x1] %vm80_vm0, %v378_v0  ;;  %v85_v5 = vld [vmem:[#allocation2] sm:$0xff]  ;;  %232 = vmatmul.msk.f32.vlgmr.msra.gmra.mxu3 %vm91_vm1, %v90_v4  ;;  %133 = vmatpush.msra.mxu1 %v86_v6  ;;  %s195_s2 = sshll.u32 %s379_s0, 4  ;;  %s380_s10 = smov [#allocation9]   ;;  %s196_s2 = int_to_ptr.vmem [resolvable:$true] %s195_s2 }
  0x14   :  { %84 = vst.msk [vmem:[#allocation9 + $0x1] sm:$0x1] %vm80_vm0, %v378_v0  ;;  %110 = vmatpush.msra.mxu0 %v85_v5  ;;  %230 = vmatmul.msk.f32.vlgmr.msra.gmra.mxu1 %vm91_vm1, %v90_v4  ;;  %s208_s11 = sshll.u32 %s380_s10, 4  ;;  %s210_s14 = sshll.u32 %s442_s4, 4  ;;  %s209_s11 = int_to_ptr.vmem [resolvable:$true] %s208_s11  ;;  %s211_s14 = int_to_ptr.hbm [resolvable:$true] %s210_s14 }
  0x15   :  { %229 = vmatmul.msk.f32.vlgmr.msra.gmra.mxu0 %vm91_vm1, %v89_v3 }
  0x18   :  { %v178_v7 = vld [vmem:[#allocation8] sm:$0x1] }
  0x19   :  { %v179_v8 = vld [vmem:[#allocation8 + $0x1] sm:$0x1] }
  0x1a   :  { %v185_v13 = vld [vmem:[#allocation9] sm:$0x1] }
  0x1b   :  { %v186_v14 = vld [vmem:[#allocation9 + $0x1] sm:$0x1] }
  0x91   :  { %v135_v10 = vpop.f32.mrf.mxu1 }
  0x92   :  { %v112_v9 = vpop.f32.mrf.mxu0  ;;  %v181_v12 = vadd.f32 %v179_v8, %v135_v10 }
  0x93   :  { %v180_v11 = vadd.f32 %v178_v7, %v112_v9 }
  0x94   :  { %184 = vst.msk [vmem:[#allocation8 + $0x1] sm:$0x1] %vm80_vm0, %v181_v12 }
  0x95   :  { %183 = vst.msk [vmem:[#allocation8] sm:$0x1] %vm80_vm0, %v180_v11  ;;  %v155_v15 = vpop.f32.mrf.mxu2 }
  0x96   :  { %v175_v16 = vpop.f32.mrf.mxu3  ;;  %v187_v17 = vadd.f32 %v185_v13, %v155_v15  ;;  %203 = dma.vmem_to_hbm [thread:$0]  %s196_s2, 32, %s198_s9, [#allocation4], %s376_s5, %s376_s5, %s377_s6  }
  0x97   :  { %v188_v18 = vadd.f32 %v186_v14, %v175_v16 }
  0x98   :  { %189 = vst.msk [vmem:[#allocation9] sm:$0x1] %vm80_vm0, %v187_v17 }
  0x99   :  { %190 = vst.msk [vmem:[#allocation9 + $0x1] sm:$0x1] %vm80_vm0, %v188_v18 }
  0x9a   :  { %216 = dma.vmem_to_hbm [thread:$0]  %s209_s11, 32, %s211_s14, [#allocation10], %s376_s5, %s376_s5, %s377_s6  }
  0x9b   :  { %367 = dma.done.wait [#allocation4], 32  }
  0x9c   :  { %368 = vsyncadd [#allocation4], 4294967264 }
  0x9d   :  { %369 = dma.done.wait [#allocation10], 32  }
  0x9e   :  { %370 = vsyncadd [#allocation10], 4294967264 }
  0x9f   :  { %225 = vsyncpa [#allocation3], 1 }
  0xa0   :  { %226 = vsyncpa [#allocation6], 1 }
  0xa1   :  { %227 = vsyncpa [#allocation4], 1 }
  0xa2   :  { %228 = vsyncpa [#allocation10], 1 }

</bundles_post_ra>
